<compile_context>
chip_gen: v7x
topology: tpu7x:2x2x1
jax: 0.10.0
libtpu: 0.0.40
codegen_flags: <defaults>
</compile_context>

<pallas_src>
import functools
import math

import jax
import jax.numpy as jnp
from jax.experimental import pallas as pl
from jax.experimental.pallas import tpu as pltpu


def _pe_add_kernel(x_ref, pe_ref, o_ref):
    # Pure elementwise add: x tile (TR, L) + resident PE block (TR, L).
    o_ref[...] = x_ref[...] + pe_ref[...]


def _pe_add_dropout_kernel(x_ref, pe_ref, bits_ref, o_ref, *, threshold, scale):
    # Inverted dropout: keep with prob (1 - p), scale survivors by 1/(1-p).
    y = x_ref[...] + pe_ref[...]
    keep = bits_ref[...] >= jnp.uint32(threshold)          # P(keep) = 1 - p
    o_ref[...] = jnp.where(keep, y * jnp.asarray(scale, dtype=y.dtype),
                           jnp.zeros_like(y))


class PositionalEncoding:
    """JAX/Pallas port of the PyTorch PositionalEncoding module."""

    def __init__(self, d_model, dropout=0.3, max_seq_len=200):
        # The PyTorch table construction breaks for odd d_model; assert instead of
        # silently producing a wrong table.
        assert d_model % 2 == 0, "d_model must be even"
        self.d_model = d_model
        self.dropout_p = float(dropout)
        self.max_seq_len = max_seq_len

        pos = jnp.arange(max_seq_len, dtype=jnp.float32)[:, None]        # (L, 1)
        two_i = jnp.arange(0, d_model, 2, dtype=jnp.float32)             # (D/2,)
        div_term = jnp.power(jnp.float32(10000.0), two_i / jnp.float32(d_model))
        pe = jnp.zeros((max_seq_len, d_model), dtype=jnp.float32)
        pe = pe.at[:, 0::2].set(jnp.sin(pos / div_term))
        pe = pe.at[:, 1::2].set(jnp.cos(pos / div_term))
        self.pe = pe[None]                                               # (1, L, D)

    @staticmethod
    def _row_tile(n_rows, lane, itemsize, target_bytes=2 * 1024 * 1024):
        # ~2 MiB per f32 buffer: fits v7x's smaller VMEM, near-roofline on v5e/v6e.
        tr = max(8, target_bytes // (lane * itemsize))
        tr = max(8, (tr // 8) * 8)                                       # sublane multiple
        return int(min(n_rows, tr))

    def __call__(self, x, *, training=False, rng=None):
        B, S, D = x.shape
        assert D == self.d_model
        # PyTorch quirk: index the PE table at position == seq_len. PyTorch raises if
        # S >= max_seq_len; JAX would silently clamp, so assert explicitly.
        assert S < self.max_seq_len, "seq_len must be < max_seq_len"
        pe_row = self.pe[0, S].astype(x.dtype)                           # (D,)

        # Lane-dense flattening: (B, S, D) -> (R, L) with L a multiple of 128 when
        # possible; otherwise fall back to (B*S, D).
        total = B * S * D
        lcm = (D * 128) // math.gcd(D, 128)
        L = lcm if total % lcm == 0 else D
        R = total // L
        x2 = x.reshape(R, L)
        pe_line = jnp.tile(pe_row, L // D)                               # (L,)

        TR = self._row_tile(R, L, x.dtype.itemsize)
        pe_block = jnp.broadcast_to(pe_line, (TR, L))                    # resident VMEM block

        grid = (pl.cdiv(R, TR),)
        row_spec = pl.BlockSpec((TR, L), lambda i: (i, 0))
        pe_spec = pl.BlockSpec((TR, L), lambda i: (0, 0))

        compiler_params = pltpu.CompilerParams(
            dimension_semantics=("parallel",),       # row tiles are independent (v7x: 2 TCs)
            vmem_limit_bytes=32 * 1024 * 1024,       # safe on v5e / v6e / v7x
        )

        if training and self.dropout_p > 0.0:
            # TODO(synk): the on-chip PRNG (pltpu.prng_random_bits) does not lower in
            # interpret/CPU mode, so dropout bits are drawn host-side with jax.random
            # and streamed through the kernel (extra HBM read, training path only).
            if rng is None:
                rng = jax.random.PRNGKey(0)
            bits = jax.random.bits(rng, (R, L), dtype=jnp.uint32)
            threshold = int(round(self.dropout_p * (2 ** 32)))
            scale = 1.0 / (1.0 - self.dropout_p)
            kernel = functools.partial(_pe_add_dropout_kernel,
                                       threshold=threshold, scale=scale)
            in_specs = [row_spec, pe_spec, pl.BlockSpec((TR, L), lambda i: (i, 0))]
            args = (x2, pe_block, bits)
        else:
            kernel = _pe_add_kernel
            in_specs = [row_spec, pe_spec]
            args = (x2, pe_block)

        out2 = pl.pallas_call(
            kernel,
            out_shape=jax.ShapeDtypeStruct((R, L), x.dtype),
            grid=grid,
            in_specs=in_specs,
            out_specs=row_spec,
            compiler_params=compiler_params,
        )(*args)
        return out2.reshape(B, S, D)


if __name__ == "__main__":
    B, S, D = 2, 8, 32
    key = jax.random.PRNGKey(0)
    x = jax.random.normal(key, (B, S, D), dtype=jnp.float32)

    module = PositionalEncoding(d_model=D, dropout=0.3, max_seq_len=200)

    # Eval-mode forward (dropout is identity), matching module.eval() in PyTorch.
    out = jax.block_until_ready(module(x, training=False))
    ref = x + module.pe[:, S]                       # (1, D) broadcast over (B, S, D)
    assert out.shape == (B, S, D)
    assert jnp.allclose(out, ref, atol=1e-6, rtol=1e-6)

    # Second eval-mode shape exercises the lane-dense retiling path (D=48 -> L=384).
    x3 = jax.random.normal(jax.random.PRNGKey(1), (2, 16, 48), dtype=jnp.float32)
    mod3 = PositionalEncoding(d_model=48, dropout=0.3, max_seq_len=200)
    out3 = jax.block_until_ready(mod3(x3, training=False))
    assert jnp.allclose(out3, x3 + mod3.pe[:, 16], atol=1e-6, rtol=1e-6)

    # Training-mode forward: inverted dropout (random realization differs from torch,
    # but every element is either 0 or (x + pe) / (1 - p)).
    out_tr = jax.block_until_ready(module(x, training=True, rng=jax.random.PRNGKey(123)))
    assert out_tr.shape == (B, S, D)
    scale = 1.0 / (1.0 - 0.3)
    ok = jnp.isclose(out_tr, 0.0) | jnp.isclose(out_tr, ref * scale, atol=1e-5, rtol=1e-5)
    assert bool(jnp.all(ok))

    print("KERNEL_OK")
</pallas_src>

<mosaic_0001>
module attributes {stable_mosaic.version = 11 : i64} {
  func.func @_pe_add_kernel(%arg0: i32, %arg1: memref<4x128xf32, #tpu.memory_space<vmem>>, %arg2: memref<4x128xf32, #tpu.memory_space<vmem>>, %arg3: memref<4x128xf32, #tpu.memory_space<vmem>>) attributes {dimension_semantics = [#tpu.dimension_semantics<parallel>], iteration_bounds = array<i64: 1>, scalar_prefetch = 0 : i64, scratch_operands = 0 : i64, tpu.core_type = #tpu.core_type<tc>, window_params = [{transform_indices = @transform_0, window_bounds = array<i64: 4, 128>}, {pipeline_mode = #tpu.pipeline_mode<synchronous>, transform_indices = @transform_1, window_bounds = array<i64: 4, 128>}, {transform_indices = @transform_2, window_bounds = array<i64: 4, 128>}]} {
    %c0 = arith.constant 0 : index
    %c0_0 = arith.constant 0 : index
    %0 = vector.load %arg1[%c0, %c0_0] : memref<4x128xf32, #tpu.memory_space<vmem>>, vector<4x128xf32>
    %c0_1 = arith.constant 0 : index
    %c0_2 = arith.constant 0 : index
    %1 = vector.load %arg2[%c0_1, %c0_2] : memref<4x128xf32, #tpu.memory_space<vmem>>, vector<4x128xf32>
    %2 = arith.addf %0, %1 : vector<4x128xf32>
    %c0_3 = arith.constant 0 : index
    %c0_4 = arith.constant 0 : index
    %3 = vector.load %arg3[%c0_3, %c0_4] : memref<4x128xf32, #tpu.memory_space<vmem>>, vector<4x128xf32>
    tpu.vector_store %arg3[%c0_3, %c0_4], %2 {strides = array<i32>} : memref<4x128xf32, #tpu.memory_space<vmem>>, vector<4x128xf32>,
    return
  }
  func.func @transform_0(%arg0: i32) -> (i32, i32) {
    %c0_i32 = arith.constant 0 : i32
    %c0_i32_0 = arith.constant 0 : i32
    return %arg0, %c0_i32 : i32, i32
  }
  func.func @transform_1(%arg0: i32) -> (i32, i32) {
    %c0_i32 = arith.constant 0 : i32
    %c0_i32_0 = arith.constant 0 : i32
    %c0_i32_1 = arith.constant 0 : i32
    return %c0_i32, %c0_i32_0 : i32, i32
  }
  func.func @transform_2(%arg0: i32) -> (i32, i32) {
    %c0_i32 = arith.constant 0 : i32
    %c0_i32_0 = arith.constant 0 : i32
    return %arg0, %c0_i32 : i32, i32
  }
}

</mosaic_0001>

<bundles_post_ra>
// kernel: tpu_custom_call.1
= control target key start
LH: loop header
LB: loop body
LE: loop exit
PB: predicated region body
PF: predicated region fallthrough
CT: control target
= control target key end

     0   :  { %7 = vsyncpa [#allocation3], 0  ;;  %s185_s0 = inlined_call_operand.hbm [shape: f32[4,128], index: 0, kind: input, shape index: {}]   ;;  %s186_s1 = inlined_call_operand.hbm [shape: f32[4,128], index: 1, kind: input, shape index: {}]   ;;  %s187_s2 = inlined_call_operand.hbm [shape: f32[4,128], index: 2, kind: output, shape index: {}]  }
   0x1   :  { %8 = vsyncpa [#allocation6], 0 }
   0x2   :  { %9 = vsyncpa [#allocation4], 0  ;;  %s131_s9 = smov [#allocation2]   ;;  %s132_s11 = smov [#allocation5]  }
   0x3   :  { %s16_s10 = sshll.u32 %s131_s9, 4  ;;  %s26_s12 = sshll.u32 %s132_s11, 4  ;;  %s17_s10 = int_to_ptr.vmem [resolvable:$true] %s16_s10  ;;  %s27_s12 = int_to_ptr.vmem [resolvable:$true] %s26_s12 }
   0x4   :  { %s59_s15 = scalar_lea.hbm %s185_s0, 64 }
   0x5   :  { %p60_p0 = scmp.ne.s32.totalorder %s185_s0, %s59_s15  ;;  %p63_p1 = scmp.lt.u32.totalorder %s59_s15, %s185_s0 }
   0x7   :  { %p65_p2 = pnand %p63_p1, %p60_p0 }
   0x9   :  { %68 = shalt.err (!%p65_p2)
}
   0xa   :  { %s69_s20 = scalar_lea.vmem %s17_s10, 64  ;;  %p74_p4 = scmp.lt.s32.totalorder %s17_s10, %s17_s10 }
   0xb   :  { %p70_p3 = scmp.ne.s32.totalorder %s17_s10, %s69_s20  ;;  %p75_p5 = scmp.lt.s32.totalorder %s69_s20, %s69_s20 }
   0xd   :  { %p76_p6 = por %p75_p5, %p74_p4 }
   0xf   :  { %p77_p7 = pnand %p76_p6, %p70_p3 }
  0x11   :  { %80 = shalt.err (!%p77_p7)
}
  0x12   :  { %19 = dma.hbm_to_vmem [thread:$0]  %s185_s0, 64, %s17_s10, [#allocation3]  }
  0x13   :  { %s81_s25 = scalar_lea.hbm %s186_s1, 64 }
  0x14   :  { %p82_p8 = scmp.ne.s32.totalorder %s186_s1, %s81_s25  ;;  %p85_p9 = scmp.lt.u32.totalorder %s81_s25, %s186_s1 }
  0x16   :  { %p87_p10 = pnand %p85_p9, %p82_p8 }
  0x18   :  { %90 = shalt.err (!%p87_p10)
}
  0x19   :  { %s91_s30 = scalar_lea.vmem %s27_s12, 64  ;;  %p96_p12 = scmp.lt.s32.totalorder %s27_s12, %s27_s12 }
  0x1a   :  { %p92_p11 = scmp.ne.s32.totalorder %s27_s12, %s91_s30  ;;  %p97_p13 = scmp.lt.s32.totalorder %s91_s30, %s91_s30 }
  0x1c   :  { %p98_p0 = por %p97_p13, %p96_p12 }
  0x1e   :  { %p99_p1 = pnand %p98_p0, %p92_p11 }
  0x20   :  { %102 = shalt.err (!%p99_p1)
}
  0x21   :  { %29 = dma.hbm_to_vmem [thread:$0]  %s186_s1, 64, %s27_s12, [#allocation6]  }
  0x22   :  { %125 = dma.done.wait [#allocation3], 64  }
  0x23   :  { %126 = vsyncadd [#allocation3], 4294967232 }
  0x24   :  { %127 = dma.done.wait [#allocation6], 64  }
  0x25   :  { %128 = vsyncadd [#allocation6], 4294967232  ;;  %s133_s4 = smov [#allocation7]   ;;  %v36_v0 = vld [vmem:[#allocation2] sm:$0xf] }
  0x26   :  { %s46_s5 = sshll.u32 %s133_s4, 4  ;;  %v37_v1 = vld [vmem:[#allocation5] sm:$0xf]  ;;  %s47_s5 = int_to_ptr.vmem [resolvable:$true] %s46_s5 }
  0x27   :  { %v38_v2 = vadd.f32 %v37_v1, %v36_v0  ;;  %s103_s6 = scalar_lea.vmem %s47_s5, 64  ;;  %p108_p3 = scmp.lt.s32.totalorder %s47_s5, %s47_s5 }
  0x28   :  { %p104_p2 = scmp.ne.s32.totalorder %s47_s5, %s103_s6  ;;  %p109_p4 = scmp.lt.s32.totalorder %s103_s6, %s103_s6 }
  0x29   :  { %39 = vst [vmem:[#allocation7] sm:$0xf] %v38_v2 }
  0x2a   :  { %p110_p5 = por %p109_p4, %p108_p3 }
  0x2c   :  { %p111_p6 = pnand %p110_p5, %p104_p2 }
  0x2e   :  { %114 = shalt.err (!%p111_p6)
}
  0x2f   :  { %s115_s8 = scalar_lea.hbm %s187_s2, 64 }
  0x30   :  { %p116_p7 = scmp.ne.s32.totalorder %s187_s2, %s115_s8  ;;  %p119_p8 = scmp.lt.u32.totalorder %s115_s8, %s187_s2 }
  0x32   :  { %p121_p9 = pnand %p119_p8, %p116_p7 }
  0x34   :  { %124 = shalt.err (!%p121_p9)
}
  0x35   :  { %49 = dma.vmem_to_hbm [thread:$0]  %s47_s5, 64, %s187_s2, [#allocation4]  }
  0x36   :  { %129 = dma.done.wait [#allocation4], 64  }
  0x37   :  { %130 = vsyncadd [#allocation4], 4294967232 }
  0x38   :  { %53 = vsyncpa [#allocation3], 1 }
  0x39   :  { %54 = vsyncpa [#allocation6], 1 }
  0x3a   :  { %55 = vsyncpa [#allocation4], 1 }

</bundles_post_ra>
